<compile_context>
chip_gen: v7x
topology: tpu7x:2x2x1
jax: 0.10.0
libtpu: 0.0.40
codegen_flags: <defaults>
</compile_context>

<pallas_src>
import jax
import jax.numpy as jnp
from jax.experimental import pallas as pl
from jax.experimental.pallas import tpu as pltpu


def _round_up(x, m):
    return (x + m - 1) // m * m


def _make_ce_kernel(B, K, TB):
    """Kernel over one batch tile; emits per-tile (loss_sum, valid_count)."""

    def kernel(logits_ref, targets_ref, psum_ref, pcnt_ref):
        i = pl.program_id(0)

        x = logits_ref[...].astype(jnp.float32)      # [TB, Kp] (cast in-kernel)
        tgt = targets_ref[...]                       # [TB, 1] int32
        tb, kp = x.shape

        # Numerically stable log-sum-exp along the class (lane) axis.
        # Padded class columns hold the dtype minimum -> exp() contributes 0.
        m = jnp.max(x, axis=-1, keepdims=True)                        # [TB, 1]
        lse = m + jnp.log(jnp.sum(jnp.exp(x - m), axis=-1,
                                  keepdims=True))                     # [TB, 1]

        # Gather logits[i, targets[i]] without materializing a one-hot.
        col = jax.lax.broadcasted_iota(jnp.int32, (tb, kp), 1)
        tgt_logit = jnp.sum(jnp.where(col == tgt, x, 0.0), axis=-1,
                            keepdims=True)                            # [TB, 1]

        per_example = lse - tgt_logit                                 # [TB, 1]

        # Mask: rows past the true batch size and invalid targets
        # (covers PyTorch's ignore_index=-100 and our -1 row padding).
        row = jax.lax.broadcasted_iota(jnp.int32, (tb, 1), 0) + i * TB
        valid = (row < B) & (tgt >= 0) & (tgt < K)
        vf = valid.astype(jnp.float32)                                # [TB, 1]

        part_sum = jnp.sum(per_example * vf)
        part_cnt = jnp.sum(vf)

        # Each tile owns one (8,128)-aligned output block (unmasked vst);
        # the wrapper reads element [0, 0] of every block and reduces.
        psum_ref[...] = jnp.zeros((8, 128), jnp.float32) + part_sum
        pcnt_ref[...] = jnp.zeros((8, 128), jnp.float32) + part_cnt

    return kernel


def cross_entropy_adv_loss(logits, targets, block_b=None):
    """Pallas equivalent of CrossEntropyAdvLoss.forward.

    Args:
      logits:  [B, K] float array (any float dtype; upcast to f32 in-kernel).
      targets: [B] integer class indices.
      block_b: optional batch tile override (multiple of 8), for testing.
    Returns:
      scalar float32 mean cross-entropy loss.
    """
    B, K = logits.shape
    in_dtype = logits.dtype
    itemsize = jnp.dtype(in_dtype).itemsize

    # Lane-dense class dim: pad K up to a multiple of 128.
    Kp = max(128, _round_up(K, 128))

    # Batch tile: as large as comfortably fits a double-buffered input tile
    # plus f32 temporaries within a VMEM budget safe on v5e/v6e/v7x, then
    # balanced across the batch so the padded tail tile stays small.
    if block_b is None:
        vmem_budget = 20 * 1024 * 1024
        per_row_bytes = Kp * (2 * itemsize + 16)  # 2x input bufs + f32 temps
        cap = min(2048, max(8, (vmem_budget // per_row_bytes) // 8 * 8))
        n_tiles = -(-B // cap)                    # ceil
        TB = min(cap, _round_up(-(-B // n_tiles), 8))
    else:
        TB = max(8, _round_up(block_b, 8))
    Bp = _round_up(B, TB)
    num_blocks = Bp // TB

    # Pad inputs: extra rows with 0 (masked in-kernel), extra class columns
    # with the dtype's most-negative finite value so exp() of them is 0.
    if jnp.issubdtype(in_dtype, jnp.floating):
        neg = float(jnp.finfo(in_dtype).min)
    else:
        neg = float(jnp.finfo(jnp.float32).min)
    x = logits
    if Bp != B:
        x = jnp.pad(x, ((0, Bp - B), (0, 0)))
    if Kp != K:
        x = jnp.pad(x, ((0, 0), (0, Kp - K)), constant_values=neg)

    t = targets.astype(jnp.int32).reshape(B, 1)
    if Bp != B:
        t = jnp.pad(t, ((0, Bp - B), (0, 0)), constant_values=-1)

    kernel = _make_ce_kernel(B, K, TB)

    cost = pl.CostEstimate(
        flops=6 * Bp * Kp,
        transcendentals=Bp * Kp + Bp,
        bytes_accessed=Bp * Kp * itemsize + Bp * 4
        + 2 * num_blocks * 8 * 128 * 4,
    )

    out_sum, out_cnt = pl.pallas_call(
        kernel,
        out_shape=(
            jax.ShapeDtypeStruct((num_blocks * 8, 128), jnp.float32),
            jax.ShapeDtypeStruct((num_blocks * 8, 128), jnp.float32),
        ),
        grid_spec=pltpu.PrefetchScalarGridSpec(
            num_scalar_prefetch=0,
            grid=(num_blocks,),
            in_specs=[
                pl.BlockSpec((TB, Kp), lambda i: (i, 0)),   # logits tile
                pl.BlockSpec((TB, 1), lambda i: (i, 0)),    # targets tile
            ],
            out_specs=[
                pl.BlockSpec((8, 128), lambda i: (i, 0)),   # per-tile loss sum
                pl.BlockSpec((8, 128), lambda i: (i, 0)),   # per-tile count
            ],
        ),
        compiler_params=pltpu.CompilerParams(
            dimension_semantics=("parallel",),   # independent tiles -> megacore
            vmem_limit_bytes=40 * 1024 * 1024,
        ),
        cost_estimate=cost,
    )(x, t)

    total_sum = jnp.sum(out_sum.reshape(num_blocks, 8, 128)[:, 0, 0])
    total_cnt = jnp.sum(out_cnt.reshape(num_blocks, 8, 128)[:, 0, 0])
    return total_sum / total_cnt


def _reference_loss(logits, targets):
    lse = jax.scipy.special.logsumexp(logits.astype(jnp.float32), axis=-1)
    picked = logits.astype(jnp.float32)[jnp.arange(logits.shape[0]), targets]
    return jnp.mean(lse - picked)


if __name__ == "__main__":
    key = jax.random.PRNGKey(0)

    # Case 1: shapes matching the module's [B, K] logits / [B] targets.
    k1, k2, k3, k4 = jax.random.split(key, 4)
    B, K = 8, 32
    logits = jax.random.normal(k1, (B, K), dtype=jnp.float32)
    targets = jax.random.randint(k2, (B,), 0, K, dtype=jnp.int32)

    loss = cross_entropy_adv_loss(logits, targets)
    jax.block_until_ready(loss)
    ref = _reference_loss(logits, targets)
    assert jnp.allclose(loss, ref, atol=1e-5, rtol=1e-5), (loss, ref)

    # Case 2: ragged batch, non-128 vocab, bf16 input, multiple batch tiles
    # (exercises padding/masking and the multi-tile parallel reduction path).
    B2, K2 = 50, 200
    logits2 = jax.random.normal(k3, (B2, K2), dtype=jnp.bfloat16)
    targets2 = jax.random.randint(k4, (B2,), 0, K2, dtype=jnp.int32)

    loss2 = cross_entropy_adv_loss(logits2, targets2, block_b=16)
    jax.block_until_ready(loss2)
    ref2 = _reference_loss(logits2, targets2)
    assert jnp.allclose(loss2, ref2, atol=2e-2, rtol=2e-2), (loss2, ref2)

    print("KERNEL_OK")
</pallas_src>

<mosaic_0001>
module attributes {stable_mosaic.version = 11 : i64} {
  func.func @kernel(%arg0: i32, %arg1: memref<8x128xf32, #tpu.memory_space<vmem>>, %arg2: memref<8x1xi32, #tpu.memory_space<vmem>>, %arg3: memref<8x128xf32, #tpu.memory_space<vmem>>, %arg4: memref<8x128xf32, #tpu.memory_space<vmem>>) attributes {dimension_semantics = [#tpu.dimension_semantics<parallel>], iteration_bounds = array<i64: 1>, scalar_prefetch = 0 : i64, scratch_operands = 0 : i64, tpu.core_type = #tpu.core_type<tc>, window_params = [{transform_indices = @transform_0, window_bounds = array<i64: 8, 128>}, {transform_indices = @transform_1, window_bounds = array<i64: 8, 1>}, {transform_indices = @transform_2, window_bounds = array<i64: 8, 128>}, {transform_indices = @transform_3, window_bounds = array<i64: 8, 128>}]} {
    %c0 = arith.constant 0 : index
    %c0_0 = arith.constant 0 : index
    %0 = vector.load %arg1[%c0, %c0_0] : memref<8x128xf32, #tpu.memory_space<vmem>>, vector<8x128xf32>
    %c0_1 = arith.constant 0 : index
    %c0_2 = arith.constant 0 : index
    %1 = vector.load %arg2[%c0_1, %c0_2] : memref<8x1xi32, #tpu.memory_space<vmem>>, vector<8x1xi32>
    %cst = arith.constant dense<0xFF800000> : vector<8xf32>
    %2 = vector.multi_reduction <maximumf>, %0, %cst [1] : vector<8x128xf32> to vector<8xf32>
    %3 = vector.shape_cast %2 : vector<8xf32> to vector<8x1xf32>
    %4 = vector.broadcast %3 : vector<8x1xf32> to vector<8x128xf32>
    %5 = arith.subf %0, %4 : vector<8x128xf32>
    %6 = math.exp %5 : vector<8x128xf32>
    %cst_3 = arith.constant dense<0.000000e+00> : vector<8xf32>
    %7 = vector.multi_reduction <add>, %6, %cst_3 [1] : vector<8x128xf32> to vector<8xf32>
    %8 = vector.shape_cast %7 : vector<8xf32> to vector<8x1xf32>
    %9 = math.log %8 : vector<8x1xf32>
    %10 = arith.addf %3, %9 : vector<8x1xf32>
    %11 = tpu.iota {dimensions = array<i32: 1>} : vector<8x128xi32>
    %12 = vector.broadcast %1 : vector<8x1xi32> to vector<8x128xi32>
    %13 = arith.cmpi eq, %11, %12 : vector<8x128xi32>
    %cst_4 = arith.constant 0.000000e+00 : f32
    %14 = vector.broadcast %cst_4 : f32 to vector<8x128xf32>
    %15 = arith.select %13, %0, %14 : vector<8x128xi1>, vector<8x128xf32>
    %cst_5 = arith.constant dense<0.000000e+00> : vector<8xf32>
    %16 = vector.multi_reduction <add>, %15, %cst_5 [1] : vector<8x128xf32> to vector<8xf32>
    %17 = vector.shape_cast %16 : vector<8xf32> to vector<8x1xf32>
    %18 = arith.subf %10, %17 : vector<8x1xf32>
    %19 = tpu.iota {dimensions = array<i32: 0>} : vector<8x1xi32>
    %c8_i32 = arith.constant 8 : i32
    %20 = arith.muli %arg0, %c8_i32 : i32
    %21 = vector.broadcast %20 : i32 to vector<8x1xi32>
    %22 = arith.addi %19, %21 : vector<8x1xi32>
    %c8_i32_6 = arith.constant 8 : i32
    %23 = vector.broadcast %c8_i32_6 : i32 to vector<8x1xi32>
    %24 = arith.cmpi slt, %22, %23 : vector<8x1xi32>
    %c0_i32 = arith.constant 0 : i32
    %25 = vector.broadcast %c0_i32 : i32 to vector<8x1xi32>
    %26 = arith.cmpi sge, %1, %25 : vector<8x1xi32>
    %27 = arith.andi %24, %26 : vector<8x1xi1>
    %c32_i32 = arith.constant 32 : i32
    %28 = vector.broadcast %c32_i32 : i32 to vector<8x1xi32>
    %29 = arith.cmpi slt, %1, %28 : vector<8x1xi32>
    %30 = arith.andi %27, %29 : vector<8x1xi1>
    %31 = arith.extui %30 : vector<8x1xi1> to vector<8x1xi32>
    %32 = arith.sitofp %31 : vector<8x1xi32> to vector<8x1xf32>
    %33 = arith.mulf %18, %32 : vector<8x1xf32>
    %34 = vector.shape_cast %33 : vector<8x1xf32> to vector<1x8x1xf32>
    %cst_7 = arith.constant dense<0.000000e+00> : vector<1xf32>
    %35 = vector.multi_reduction <add>, %34, %cst_7 [1, 2] : vector<1x8x1xf32> to vector<1xf32>
    %36 = vector.shape_cast %35 : vector<1xf32> to vector<1x1x1xf32>
    %37 = vector.extract %36[0, 0, 0] : f32 from vector<1x1x1xf32>
    %38 = vector.shape_cast %32 : vector<8x1xf32> to vector<1x8x1xf32>
    %cst_8 = arith.constant dense<0.000000e+00> : vector<1xf32>
    %39 = vector.multi_reduction <add>, %38, %cst_8 [1, 2] : vector<1x8x1xf32> to vector<1xf32>
    %40 = vector.shape_cast %39 : vector<1xf32> to vector<1x1x1xf32>
    %41 = vector.extract %40[0, 0, 0] : f32 from vector<1x1x1xf32>
    %cst_9 = arith.constant 0.000000e+00 : f32
    %42 = vector.broadcast %cst_9 : f32 to vector<8x128xf32>
    %43 = vector.broadcast %37 : f32 to vector<8x128xf32>
    %44 = arith.addf %42, %43 : vector<8x128xf32>
    %c0_10 = arith.constant 0 : index
    %c0_11 = arith.constant 0 : index
    %45 = vector.load %arg3[%c0_10, %c0_11] : memref<8x128xf32, #tpu.memory_space<vmem>>, vector<8x128xf32>
    tpu.vector_store %arg3[%c0_10, %c0_11], %44 {strides = array<i32>} : memref<8x128xf32, #tpu.memory_space<vmem>>, vector<8x128xf32>,
    %cst_12 = arith.constant 0.000000e+00 : f32
    %46 = vector.broadcast %cst_12 : f32 to vector<8x128xf32>
    %47 = vector.broadcast %41 : f32 to vector<8x128xf32>
    %48 = arith.addf %46, %47 : vector<8x128xf32>
    %c0_13 = arith.constant 0 : index
    %c0_14 = arith.constant 0 : index
    %49 = vector.load %arg4[%c0_13, %c0_14] : memref<8x128xf32, #tpu.memory_space<vmem>>, vector<8x128xf32>
    tpu.vector_store %arg4[%c0_13, %c0_14], %48 {strides = array<i32>} : memref<8x128xf32, #tpu.memory_space<vmem>>, vector<8x128xf32>,
    return
  }
  func.func @transform_0(%arg0: i32) -> (i32, i32) {
    %c0_i32 = arith.constant 0 : i32
    %c0_i32_0 = arith.constant 0 : i32
    return %arg0, %c0_i32 : i32, i32
  }
  func.func @transform_1(%arg0: i32) -> (i32, i32) {
    %c0_i32 = arith.constant 0 : i32
    %c0_i32_0 = arith.constant 0 : i32
    return %arg0, %c0_i32 : i32, i32
  }
  func.func @transform_2(%arg0: i32) -> (i32, i32) {
    %c0_i32 = arith.constant 0 : i32
    %c0_i32_0 = arith.constant 0 : i32
    return %arg0, %c0_i32 : i32, i32
  }
  func.func @transform_3(%arg0: i32) -> (i32, i32) {
    %c0_i32 = arith.constant 0 : i32
    %c0_i32_0 = arith.constant 0 : i32
    return %arg0, %c0_i32 : i32, i32
  }
}

</mosaic_0001>

<bundles_post_ra>
// kernel: tpu_custom_call.1
= control target key start
LH: loop header
LB: loop body
LE: loop exit
PB: predicated region body
PF: predicated region fallthrough
CT: control target
= control target key end

     0   :  { %9 = vsyncpa [#allocation3], 0  ;;  %s221_s0 = inlined_call_operand.vmem [shape: f32[8,128], index: 0, kind: input, shape index: {}]   ;;  %s222_s1 = inlined_call_operand.vmem [shape: s32[8,1], index: 1, kind: input, shape index: {}]   ;;  %s223_s2 = inlined_call_operand.hbm [shape: f32[8,128], index: 2, kind: output, shape index: {0}]   ;;  %s224_s3 = inlined_call_operand.hbm [shape: f32[8,128], index: 3, kind: output, shape index: {1}]  }
   0x1   :  { %v15_v0 = vld [vmem:[%s221_s0] sm:$0xff] }
   0x2   :  { %10 = vsyncpa [#allocation5], 0  ;;  %17 = vmax.xlane.f32.xlu0 %v15_v0  ;;  %v167_v1 = vmov 0   ;;  %v16_v2 = vld [vmem:[%s222_s1] sm:$0xff]  ;;  %v27_v6 = vlaneseq  ;;  %v168_v16 = vmov 0.0   ;;  %vm50_vm4 = vcmask 7168  }
   0x3   :  { %114 = vset.pattern.permute.xlu0 %v167_v1  ;;  %vm43_vm1 = vcmp.ge.s32.totalorder %v16_v2, 0  ;;  %vm45_vm2 = vcmp.lt.s32.totalorder %v16_v2, 32  ;;  %s169_s0 = smov [#allocation2]   ;;  %s170_s17 = smov [#allocation4]  }
   0x4   :  { %v28_v7 = vand.u32 127, %v27_v6  ;;  %vm46_vm3 = vmand %vm43_vm1, %vm45_vm2  ;;  %s83_s1 = sshll.u32 %s169_s0, 4  ;;  %s93_s18 = sshll.u32 %s170_s17, 4  ;;  %s84_s1 = int_to_ptr.vmem [resolvable:$true] %s83_s1  ;;  %s94_s18 = int_to_ptr.vmem [resolvable:$true] %s93_s18 }
   0x5   :  { %v105_v17 = vsel %vm46_vm3, 1.0, %v168_v16  ;;  %s119_s19 = scalar_lea.vmem %s84_s1, 128  ;;  %p124_p1 = scmp.lt.s32.totalorder %s84_s1, %s84_s1 }
   0x6   :  { %v61_v21 = vsel %vm50_vm4, %v105_v17, 0.0  ;;  %p120_p0 = scmp.ne.s32.totalorder %s84_s1, %s119_s19  ;;  %p125_p2 = scmp.lt.s32.totalorder %s119_s19, %s119_s19 }
   0x8   :  { %p126_p3 = por %p125_p2, %p124_p1 }
   0xa   :  { %p127_p4 = pnand %p126_p3, %p120_p0 }
  0x18   :  { %30 = vperm.xlu0 %114, %v16_v2  }
  0x8f   :  { %v18_v3 = vpop.xlane.xlu0 %17 }
  0x90   :  { %v19_v4 = vsub.f32 %v15_v0, %v18_v3 }
  0x92   :  { %v20_v5 = vmul.f32 1.442695, %v19_v4 }
  0x94   :  { %115 = vpow2.f32 %v20_v5 }
  0x97   :  { %v31_v8 = vpop.permute.xlu0 %30 }
  0x98   :  { %vm32_vm0 = vcmp.eq.s32.totalorder %v28_v7, %v31_v8 }
  0x99   :  { %v33_v10 = vsel %vm32_vm0, %v15_v0, 0.0 }
  0x9e   :  { %v116_v9 = vpop.eup %115 }
  0x9f   :  { %22 = vadd.xlane.f32.xlu1 %v116_v9 }
  0xa3   :  { %34 = vadd.xlane.f32.xlu1 %v33_v10 }
 0x12c   :  { %v23_v11 = vpop.xlane.xlu1 %22 }
 0x12d   :  { %117 = vlog2.f32 %v23_v11 }
 0x130   :  { %v35_v14 = vpop.xlane.xlu1 %34 }
 0x137   :  { %v118_v12 = vpop.eup %117 }
 0x138   :  { %v25_v13 = vmul.f32 0.6931472, %v118_v12 }
 0x13a   :  { %v26_v15 = vadd.f32 %v25_v13, %v18_v3 }
 0x13c   :  { %v36_v18 = vsub.f32 %v26_v15, %v35_v14 }
 0x13e   :  { %v49_v19 = vmul.f32 %v105_v17, %v36_v18 }
 0x140   :  { %v51_v20 = vsel %vm50_vm4, %v49_v19, 0.0 }
 0x141   :  { %52 = vadd.xlane.f32.xlu1 %v51_v20 }
 0x145   :  { %62 = vadd.xlane.f32.xlu1 %v61_v21 }
 0x1ce   :  { %v53_v22 = vpop.xlane.xlu1 %52 }
 0x1cf   :  { %v54_v23 = vrot.slane %v53_v22, 4 }
 0x1d1   :  { %v55_v24 = vadd.f32 %v54_v23, %v53_v22 }
 0x1d2   :  { %v63_v25 = vpop.xlane.xlu1 %62 }
 0x1d3   :  { %v56_v26 = vrot.slane %v55_v24, 2  ;;  %v64_v27 = vrot.slane %v63_v25, 4 }
 0x1d5   :  { %v65_v28 = vadd.f32 %v64_v27, %v63_v25  ;;  %v57_v29 = vadd.f32 %v56_v26, %v55_v24 }
 0x1d7   :  { %v66_v30 = vrot.slane %v65_v28, 2  ;;  %v58_v31 = vrot.slane %v57_v29, 1 }
 0x1d9   :  { %v67_v32 = vadd.f32 %v66_v30, %v65_v28  ;;  %v59_v33 = vadd.f32 %v58_v31, %v57_v29 }
 0x1db   :  { %106 = vpush %v59_v33  ;;  %v68_v34 = vrot.slane %v67_v32, 1 }
 0x1dd   :  { %v69_v35 = vadd.f32 %v68_v34, %v67_v32 }
 0x1df   :  { %108 = vpush %v69_v35 }
 0x20c   :  { %s107_s16 = spop %106 }
 0x20d   :  { %v71_v36 = vstv %s107_s16 }
 0x20e   :  { %73 = vst [vmem:[#allocation2] sm:$0xff] %v71_v36 }
 0x20f   :  { %130 = shalt.err (!%p127_p4)
}
 0x210   :  { %s131_s22 = scalar_lea.hbm %s223_s2, 128 }
 0x211   :  { %p132_p5 = scmp.ne.s32.totalorder %s223_s2, %s131_s22  ;;  %p135_p6 = scmp.lt.u32.totalorder %s131_s22, %s223_s2 }
 0x213   :  { %p137_p7 = pnand %p135_p6, %p132_p5 }
 0x215   :  { %140 = shalt.err (!%p137_p7)
}
 0x216   :  { %86 = dma.vmem_to_hbm [thread:$0]  %s84_s1, 128, %s223_s2, [#allocation3]  }
 0x217   :  { %s109_s29 = spop %108  ;;  %s141_s30 = scalar_lea.vmem %s94_s18, 128 }
 0x218   :  { %v74_v37 = vstv %s109_s29  ;;  %p142_p8 = scmp.ne.s32.totalorder %s94_s18, %s141_s30  ;;  %p146_p9 = scmp.lt.s32.totalorder %s94_s18, %s94_s18 }
 0x219   :  { %76 = vst [vmem:[#allocation4] sm:$0xff] %v74_v37  ;;  %p147_p10 = scmp.lt.s32.totalorder %s141_s30, %s141_s30 }
 0x21b   :  { %p148_p11 = por %p147_p10, %p146_p9 }
 0x21d   :  { %p149_p12 = pnand %p148_p11, %p142_p8 }
 0x21f   :  { %152 = shalt.err (!%p149_p12)
}
 0x220   :  { %s153_s6 = scalar_lea.hbm %s224_s3, 128 }
 0x221   :  { %p154_p13 = scmp.ne.s32.totalorder %s224_s3, %s153_s6  ;;  %p157_p0 = scmp.lt.u32.totalorder %s153_s6, %s224_s3 }
 0x223   :  { %p159_p1 = pnand %p157_p0, %p154_p13 }
 0x225   :  { %162 = shalt.err (!%p159_p1)
}
 0x226   :  { %96 = dma.vmem_to_hbm [thread:$0]  %s94_s18, 128, %s224_s3, [#allocation5]  }
 0x227   :  { %163 = dma.done.wait [#allocation3], 128  }
 0x228   :  { %164 = vsyncadd [#allocation3], 4294967168 }
 0x229   :  { %165 = dma.done.wait [#allocation5], 128  }
 0x22a   :  { %166 = vsyncadd [#allocation5], 4294967168 }
 0x22b   :  { %103 = vsyncpa [#allocation3], 1 }
 0x22c   :  { %104 = vsyncpa [#allocation5], 1 }

</bundles_post_ra>
